<compile_context>
chip_gen: v6e
topology: v6e:2x2x1
jax: 0.10.0
libtpu: 0.0.40
codegen_flags: <defaults>
</compile_context>

<pallas_src>
import math
import functools

import jax
import jax.numpy as jnp
import numpy as np
from jax.experimental import pallas as pl
from jax.experimental.pallas import tpu as pltpu

# raster-preceding neighbours inside a 3x3 window (connectivity = 1)
OFFSETS = ((0, -1), (-1, -1), (-1, 0), (-1, 1))


def _elbo_partial_kernel(x_ref, mu_ref, lv_ref, zmu_ref, zlv_ref, out_ref, *,
                         B, H, W, K, l1_reg_weight, lv_flat):
    """One batch tile -> one scalar partial loss contribution.

    x_ref, mu_ref : (TB, H*W)            image / reconstruction mean, flattened
    lv_ref        : (TB, Cf*H*W) if lv_flat else (TB, Cf, H*W)
                    channel 0 = log-diagonal of L, channels 1.. = off-diag weights
    zmu_ref, zlv_ref : (TB, Cz)
    out_ref       : (1, 1, 1)            this tile's contribution to the loss
    """
    HW = H * W
    inv_b = 1.0 / B
    l1_coef = float(l1_reg_weight) / (B * K * HW)

    # Residual fused into the kernel: one VPU subtract, no HBM round trip for r.
    r = x_ref[...].astype(jnp.float32) - mu_ref[...].astype(jnp.float32)

    def channel(k):
        if lv_flat:
            # 128-aligned static lane slice (free view) when HW % 128 == 0.
            return lv_ref[:, k * HW:(k + 1) * HW].astype(jnp.float32)
        return lv_ref[:, k, :].astype(jnp.float32)

    log_d = channel(0)

    # Lane-only boundary masks, built once at (1, HW) as {0,1} f32 and broadcast.
    idx = jax.lax.broadcasted_iota(jnp.int32, (1, HW), 1)
    col = idx % W
    row_ok = (idx >= W).astype(jnp.float32)        # i-1 >= 0
    left_ok = (col > 0).astype(jnp.float32)        # j-1 >= 0
    right_ok = (col < (W - 1)).astype(jnp.float32)  # j+1 <= W-1

    ltr = jnp.exp(log_d) * r                       # diagonal term of (L r)
    abs_acc = jnp.zeros_like(r)                    # elementwise |w| accumulator

    for k, (dy, dx) in enumerate(OFFSETS[:K]):
        w = channel(1 + k)
        abs_acc = abs_acc + jnp.abs(w)

        # neighbour residual r[p + dy*W + dx] via a lane roll (XLU) + boundary mask
        rs = pltpu.roll(r, -(dy * W + dx), axis=1)
        m = None
        if dy == -1:
            m = row_ok
        if dx == -1:
            m = left_ok if m is None else m * left_ok
        elif dx == 1:
            m = right_ok if m is None else m * right_ok
        if m is not None:
            rs = rs * m                            # (1,HW) broadcast over rows
        ltr = ltr + w * rs

    # One big cross-lane reduction for NLL + L1 (instead of six separate ones).
    combined = (-inv_b) * log_d + (0.5 * inv_b) * (ltr * ltr) + l1_coef * abs_acc
    big = jnp.sum(combined)

    # Small KL partial: one reduction over (TB, Cz).
    zmu = zmu_ref[...].astype(jnp.float32)
    zlv = zlv_ref[...].astype(jnp.float32)
    kl_partial = (0.5 * inv_b) * jnp.sum(zmu * zmu + jnp.exp(zlv) - zlv)

    out_ref[...] = jnp.reshape(big + kl_partial, (1, 1, 1))


def _vmem_capacity_bytes():
    """Physical VMEM of the attached TPU; conservative v7x fallback (64 MiB)."""
    try:
        info = pltpu.get_tpu_info()
        cap = getattr(info, "vmem_capacity_bytes", None)
        if cap:
            return int(cap)
    except Exception:
        pass
    return 64 << 20


def _pick_batch_tile(B, per_sample_bytes, row_mult, budget_bytes):
    """Pick a batch tile that (a) divides B, (b) has rows that are a multiple of
    `row_mult` (8 for f32, 16 for bf16, 32 for int8/fp8) or equals B, (c) fits the
    VMEM budget, and (d) prefers G = B//TB >= 4 (then >= 2) so both v7x cores get
    work and the pipeline overlaps DMA with compute."""
    cands = [t for t in range(row_mult, B + 1, row_mult) if B % t == 0]
    if B % row_mult != 0:
        cands.append(B)            # the full-batch tile is always layout-legal
    if not cands:
        cands = [B]
    fit = [t for t in cands if t * per_sample_bytes <= budget_bytes]
    if not fit:
        # TODO(synk): add spatial (H*W) tiling for very large images; for now take
        # the smallest legal batch tile even if it exceeds the budget.
        fit = [min(cands)]
    for min_g in (4, 2, 1):
        ok = [t for t in fit if B // t >= min_g]
        if ok:
            return max(ok)
    return max(fit)


def annealed_elbo_loss(x, x_mu, x_logvar, z_mu, z_logvar, *,
                       l1_reg_weight=1.0, connectivity=1):
    assert connectivity == 1, "only connectivity=1 (4 off-diagonal channels) implemented"
    B, C, H, W = x.shape
    assert C == 1, "sparse-L precision model implemented for single-channel images"
    Cf = x_logvar.shape[1]
    K = Cf - 1
    assert 1 <= K <= len(OFFSETS)
    Cz = z_mu.shape[1]
    HW = H * W

    # Lane-dense flattening (free reshapes, no data movement).
    xf = x.reshape(B, HW)
    mf = x_mu.reshape(B, HW)
    lv_flat = (HW % 128 == 0)
    if lv_flat:
        lv = x_logvar.reshape(B, Cf * HW)
        lv_block_elems = Cf * HW
    else:
        lv = x_logvar.reshape(B, Cf, HW)
        lv_block_elems = ((Cf + 7) // 8) * 8 * HW   # sublane padding of channel axis

    # ---- generation-aware tile selection ----
    vmem_cap = _vmem_capacity_bytes()              # 64 MiB (v7x) .. 128 MiB (v5e/v6e)
    vmem_limit = int(vmem_cap * 3 // 4)            # scoped VMEM we ask the compiler for
    block_budget = vmem_limit // 2                 # headroom for scheduler/spills

    itemsizes = [a.dtype.itemsize for a in (xf, mf, lv, z_mu, z_logvar)]
    row_mult = 32 // min(itemsizes)                # 8 (f32) / 16 (bf16) / 32 (int8)
    in_bytes_per_sample = (HW * (itemsizes[0] + itemsizes[1])
                           + lv_block_elems * itemsizes[2]
                           + Cz * (itemsizes[3] + itemsizes[4]))
    # double-buffered input blocks + ~6 live f32 (TB, HW) temporaries in the body
    per_sample_bytes = 2 * in_bytes_per_sample + 6 * HW * 4

    TB = _pick_batch_tile(B, per_sample_bytes, row_mult, block_budget)
    G = B // TB

    if lv_flat:
        lv_spec = pl.BlockSpec((TB, Cf * HW), lambda b: (b, 0))
    else:
        lv_spec = pl.BlockSpec((TB, Cf, HW), lambda b: (b, 0, 0))

    kernel = functools.partial(
        _elbo_partial_kernel, B=B, H=H, W=W, K=K,
        l1_reg_weight=float(l1_reg_weight), lv_flat=lv_flat)

    partials = pl.pallas_call(
        kernel,
        out_shape=jax.ShapeDtypeStruct((G, 1, 1), jnp.float32),
        grid_spec=pltpu.PrefetchScalarGridSpec(
            num_scalar_prefetch=0,
            grid=(G,),
            in_specs=[
                pl.BlockSpec((TB, HW), lambda b: (b, 0)),      # x
                pl.BlockSpec((TB, HW), lambda b: (b, 0)),      # x_mu
                lv_spec,                                       # x_logvar
                pl.BlockSpec((TB, Cz), lambda b: (b, 0)),      # z_mu
                pl.BlockSpec((TB, Cz), lambda b: (b, 0)),      # z_logvar
            ],
            out_specs=pl.BlockSpec((1, 1, 1), lambda b: (b, 0, 0)),
        ),
        compiler_params=pltpu.CompilerParams(
            dimension_semantics=("parallel",),
            vmem_limit_bytes=vmem_limit),
    )(xf, mf, lv, z_mu, z_logvar)

    # Trivial epilogue: sum per-tile partials and add batch-independent constants
    # (0.5*D*log(2*pi) from the Gaussian normaliser, -0.5*Cz from the KL).
    const = 0.5 * HW * math.log(2.0 * math.pi) - 0.5 * Cz
    return jnp.sum(partials) + const


def reference_loss(x, x_mu, x_logvar, z_mu, z_logvar, l1_reg_weight=1.0):
    """Pure-JAX mirror of the same math, for a correctness check."""
    B, C, H, W = x.shape
    K = x_logvar.shape[1] - 1
    r = (x - x_mu)[:, 0].astype(jnp.float32)
    rp = jnp.pad(r, ((0, 0), (1, 1), (1, 1)))
    log_d = x_logvar[:, 0].astype(jnp.float32)
    ltr = jnp.exp(log_d) * r
    for k, (dy, dx) in enumerate(OFFSETS[:K]):
        rs = rp[:, 1 + dy:1 + dy + H, 1 + dx:1 + dx + W]
        ltr = ltr + x_logvar[:, 1 + k].astype(jnp.float32) * rs
    D = H * W
    logp = (jnp.sum(log_d, axis=(1, 2)) - 0.5 * jnp.sum(ltr * ltr, axis=(1, 2))
            - 0.5 * D * math.log(2.0 * math.pi))
    nll = jnp.mean(-logp)
    zl = z_logvar.astype(jnp.float32)
    zm = z_mu.astype(jnp.float32)
    kl = jnp.mean(0.5 * (jnp.sum(zm * zm, axis=1) + jnp.sum(jnp.exp(zl), axis=1)
                         - jnp.sum(zl, axis=1) - z_mu.shape[1]))
    l1 = jnp.mean(jnp.abs(x_logvar[:, 1:].astype(jnp.float32)))
    return nll + kl + l1_reg_weight * l1


if __name__ == "__main__":
    B, C, H, W, Cz = 2, 1, 16, 16, 32
    connectivity = 1
    Cf = 1 + len(OFFSETS)  # 5: log-diagonal + 4 off-diagonal channels

    key = jax.random.PRNGKey(0)
    k1, k2, k3, k4, k5 = jax.random.split(key, 5)
    x = jax.random.normal(k1, (B, C, H, W), jnp.float32)
    x_mu = jax.random.normal(k2, (B, C, H, W), jnp.float32)
    x_logvar = 0.1 * jax.random.normal(k3, (B, Cf, H, W), jnp.float32)
    z_mu = jax.random.normal(k4, (B, Cz), jnp.float32)
    z_logvar = 0.1 * jax.random.normal(k5, (B, Cz), jnp.float32)

    loss = annealed_elbo_loss(x, x_mu, x_logvar, z_mu, z_logvar,
                              l1_reg_weight=1.0, connectivity=connectivity)
    loss = jax.block_until_ready(loss)

    ref = jax.block_until_ready(
        reference_loss(x, x_mu, x_logvar, z_mu, z_logvar, 1.0))

    assert bool(jnp.isfinite(loss)), "kernel produced non-finite loss"
    np.testing.assert_allclose(np.asarray(loss), np.asarray(ref),
                               rtol=2e-3, atol=2e-3)
    print("KERNEL_OK")
</pallas_src>

<mosaic_0001>
module attributes {stable_mosaic.version = 11 : i64} {
  func.func @_elbo_partial_kernel(%arg0: i32, %arg1: memref<2x256xf32, #tpu.memory_space<vmem>>, %arg2: memref<2x256xf32, #tpu.memory_space<vmem>>, %arg3: memref<2x1280xf32, #tpu.memory_space<vmem>>, %arg4: memref<2x32xf32, #tpu.memory_space<vmem>>, %arg5: memref<2x32xf32, #tpu.memory_space<vmem>>, %arg6: memref<1x1x1xf32, #tpu.memory_space<vmem>>) attributes {dimension_semantics = [#tpu.dimension_semantics<parallel>], iteration_bounds = array<i64: 1>, scalar_prefetch = 0 : i64, scratch_operands = 0 : i64, tpu.core_type = #tpu.core_type<tc>, window_params = [{transform_indices = @transform_0, window_bounds = array<i64: 2, 256>}, {transform_indices = @transform_1, window_bounds = array<i64: 2, 256>}, {transform_indices = @transform_2, window_bounds = array<i64: 2, 1280>}, {transform_indices = @transform_3, window_bounds = array<i64: 2, 32>}, {transform_indices = @transform_4, window_bounds = array<i64: 2, 32>}, {transform_indices = @transform_5, window_bounds = array<i64: 1, 1, 1>}]} {
    %c0 = arith.constant 0 : index
    %c0_0 = arith.constant 0 : index
    %0 = vector.load %arg1[%c0, %c0_0] : memref<2x256xf32, #tpu.memory_space<vmem>>, vector<2x256xf32>
    %c0_1 = arith.constant 0 : index
    %c0_2 = arith.constant 0 : index
    %1 = vector.load %arg2[%c0_1, %c0_2] : memref<2x256xf32, #tpu.memory_space<vmem>>, vector<2x256xf32>
    %2 = arith.subf %0, %1 : vector<2x256xf32>
    %c0_3 = arith.constant 0 : index
    %c0_4 = arith.constant 0 : index
    %3 = vector.load %arg3[%c0_3, %c0_4] : memref<2x1280xf32, #tpu.memory_space<vmem>>, vector<2x256xf32>
    %4 = tpu.iota {dimensions = array<i32: 1>} : vector<1x256xi32>
    %c16_i32 = arith.constant 16 : i32
    %c0_i32 = arith.constant 0 : i32
    %5 = arith.cmpi eq, %c16_i32, %c0_i32 : i32
    %c1_i32 = arith.constant 1 : i32
    %6 = arith.select %5, %c1_i32, %c16_i32 : i32
    %7 = vector.broadcast %6 : i32 to vector<1x256xi32>
    %8 = arith.remsi %4, %7 : vector<1x256xi32>
    %c0_i32_5 = arith.constant 0 : i32
    %9 = vector.broadcast %c0_i32_5 : i32 to vector<1x256xi32>
    %10 = arith.cmpi ne, %8, %9 : vector<1x256xi32>
    %c0_i32_6 = arith.constant 0 : i32
    %11 = vector.broadcast %c0_i32_6 : i32 to vector<1x256xi32>
    %12 = arith.cmpi slt, %8, %11 : vector<1x256xi32>
    %c0_i32_7 = arith.constant 0 : i32
    %13 = arith.cmpi slt, %6, %c0_i32_7 : i32
    %14 = vector.broadcast %13 : i1 to vector<1x256xi1>
    %15 = vector.broadcast %14 : vector<1x256xi1> to vector<1x256xi1>
    %16 = arith.xori %12, %15 : vector<1x256xi1>
    %17 = arith.andi %16, %10 : vector<1x256xi1>
    %18 = vector.broadcast %6 : i32 to vector<1x256xi32>
    %19 = arith.addi %8, %18 : vector<1x256xi32>
    %20 = arith.select %17, %19, %8 : vector<1x256xi1>, vector<1x256xi32>
    %c16_i32_8 = arith.constant 16 : i32
    %21 = vector.broadcast %c16_i32_8 : i32 to vector<1x256xi32>
    %22 = arith.cmpi sge, %4, %21 : vector<1x256xi32>
    %23 = arith.extui %22 : vector<1x256xi1> to vector<1x256xi32>
    %24 = arith.sitofp %23 : vector<1x256xi32> to vector<1x256xf32>
    %c0_i32_9 = arith.constant 0 : i32
    %25 = vector.broadcast %c0_i32_9 : i32 to vector<1x256xi32>
    %26 = arith.cmpi sgt, %20, %25 : vector<1x256xi32>
    %27 = arith.extui %26 : vector<1x256xi1> to vector<1x256xi32>
    %28 = arith.sitofp %27 : vector<1x256xi32> to vector<1x256xf32>
    %c15_i32 = arith.constant 15 : i32
    %29 = vector.broadcast %c15_i32 : i32 to vector<1x256xi32>
    %30 = arith.cmpi slt, %20, %29 : vector<1x256xi32>
    %31 = arith.extui %30 : vector<1x256xi1> to vector<1x256xi32>
    %32 = arith.sitofp %31 : vector<1x256xi32> to vector<1x256xf32>
    %33 = math.exp %3 : vector<2x256xf32>
    %34 = arith.mulf %33, %2 : vector<2x256xf32>
    %cst = arith.constant 0.000000e+00 : f32
    %35 = vector.broadcast %cst : f32 to vector<2x256xf32>
    %c0_10 = arith.constant 0 : index
    %c256 = arith.constant 256 : index
    %36 = vector.load %arg3[%c0_10, %c256] : memref<2x1280xf32, #tpu.memory_space<vmem>>, vector<2x256xf32>
    %37 = math.absf %36 : vector<2x256xf32>
    %38 = arith.addf %35, %37 : vector<2x256xf32>
    %c1_i32_11 = arith.constant 1 : i32
    %39 = tpu.dynamic_rotate %2 by %c1_i32_11 dim 1 : vector<2x256xf32>, i32 -> vector<2x256xf32>
    %40 = vector.broadcast %28 : vector<1x256xf32> to vector<2x256xf32>
    %41 = arith.mulf %39, %40 : vector<2x256xf32>
    %42 = arith.mulf %36, %41 : vector<2x256xf32>
    %43 = arith.addf %34, %42 : vector<2x256xf32>
    %c0_12 = arith.constant 0 : index
    %c512 = arith.constant 512 : index
    %44 = vector.load %arg3[%c0_12, %c512] : memref<2x1280xf32, #tpu.memory_space<vmem>>, vector<2x256xf32>
    %45 = math.absf %44 : vector<2x256xf32>
    %46 = arith.addf %38, %45 : vector<2x256xf32>
    %c17_i32 = arith.constant 17 : i32
    %47 = tpu.dynamic_rotate %2 by %c17_i32 dim 1 : vector<2x256xf32>, i32 -> vector<2x256xf32>
    %48 = arith.mulf %24, %28 : vector<1x256xf32>
    %49 = vector.broadcast %48 : vector<1x256xf32> to vector<2x256xf32>
    %50 = arith.mulf %47, %49 : vector<2x256xf32>
    %51 = arith.mulf %44, %50 : vector<2x256xf32>
    %52 = arith.addf %43, %51 : vector<2x256xf32>
    %c0_13 = arith.constant 0 : index
    %c768 = arith.constant 768 : index
    %53 = vector.load %arg3[%c0_13, %c768] : memref<2x1280xf32, #tpu.memory_space<vmem>>, vector<2x256xf32>
    %54 = math.absf %53 : vector<2x256xf32>
    %55 = arith.addf %46, %54 : vector<2x256xf32>
    %c16_i32_14 = arith.constant 16 : i32
    %56 = tpu.dynamic_rotate %2 by %c16_i32_14 dim 1 : vector<2x256xf32>, i32 -> vector<2x256xf32>
    %57 = vector.broadcast %24 : vector<1x256xf32> to vector<2x256xf32>
    %58 = arith.mulf %56, %57 : vector<2x256xf32>
    %59 = arith.mulf %53, %58 : vector<2x256xf32>
    %60 = arith.addf %52, %59 : vector<2x256xf32>
    %c0_15 = arith.constant 0 : index
    %c1024 = arith.constant 1024 : index
    %61 = vector.load %arg3[%c0_15, %c1024] : memref<2x1280xf32, #tpu.memory_space<vmem>>, vector<2x256xf32>
    %62 = math.absf %61 : vector<2x256xf32>
    %63 = arith.addf %55, %62 : vector<2x256xf32>
    %c15_i32_16 = arith.constant 15 : i32
    %64 = tpu.dynamic_rotate %2 by %c15_i32_16 dim 1 : vector<2x256xf32>, i32 -> vector<2x256xf32>
    %65 = arith.mulf %24, %32 : vector<1x256xf32>
    %66 = vector.broadcast %65 : vector<1x256xf32> to vector<2x256xf32>
    %67 = arith.mulf %64, %66 : vector<2x256xf32>
    %68 = arith.mulf %61, %67 : vector<2x256xf32>
    %69 = arith.addf %60, %68 : vector<2x256xf32>
    %cst_17 = arith.constant -5.000000e-01 : f32
    %70 = vector.broadcast %cst_17 : f32 to vector<2x256xf32>
    %71 = arith.mulf %70, %3 : vector<2x256xf32>
    %72 = arith.mulf %69, %69 : vector<2x256xf32>
    %cst_18 = arith.constant 2.500000e-01 : f32
    %73 = vector.broadcast %cst_18 : f32 to vector<2x256xf32>
    %74 = arith.mulf %73, %72 : vector<2x256xf32>
    %75 = arith.addf %71, %74 : vector<2x256xf32>
    %cst_19 = arith.constant 4.8828125E-4 : f32
    %76 = vector.broadcast %cst_19 : f32 to vector<2x256xf32>
    %77 = arith.mulf %76, %63 : vector<2x256xf32>
    %78 = arith.addf %75, %77 : vector<2x256xf32>
    %79 = vector.shape_cast %78 : vector<2x256xf32> to vector<1x2x256xf32>
    %cst_20 = arith.constant dense<0.000000e+00> : vector<1xf32>
    %80 = vector.multi_reduction <add>, %79, %cst_20 [1, 2] : vector<1x2x256xf32> to vector<1xf32>
    %81 = vector.shape_cast %80 : vector<1xf32> to vector<1x1x1xf32>
    %82 = vector.extract %81[0, 0, 0] : f32 from vector<1x1x1xf32>
    %c0_21 = arith.constant 0 : index
    %c0_22 = arith.constant 0 : index
    %83 = vector.load %arg4[%c0_21, %c0_22] : memref<2x32xf32, #tpu.memory_space<vmem>>, vector<2x32xf32>
    %c0_23 = arith.constant 0 : index
    %c0_24 = arith.constant 0 : index
    %84 = vector.load %arg5[%c0_23, %c0_24] : memref<2x32xf32, #tpu.memory_space<vmem>>, vector<2x32xf32>
    %85 = arith.mulf %83, %83 : vector<2x32xf32>
    %86 = math.exp %84 : vector<2x32xf32>
    %87 = arith.addf %85, %86 : vector<2x32xf32>
    %88 = arith.subf %87, %84 : vector<2x32xf32>
    %89 = vector.shape_cast %88 : vector<2x32xf32> to vector<1x2x32xf32>
    %cst_25 = arith.constant dense<0.000000e+00> : vector<1xf32>
    %90 = vector.multi_reduction <add>, %89, %cst_25 [1, 2] : vector<1x2x32xf32> to vector<1xf32>
    %91 = vector.shape_cast %90 : vector<1xf32> to vector<1x1x1xf32>
    %92 = vector.extract %91[0, 0, 0] : f32 from vector<1x1x1xf32>
    %cst_26 = arith.constant 2.500000e-01 : f32
    %93 = arith.mulf %cst_26, %92 : f32
    %94 = arith.addf %82, %93 : f32
    %95 = vector.broadcast %94 : f32 to vector<1x1x1xf32>
    %c0_27 = arith.constant 0 : index
    %c0_28 = arith.constant 0 : index
    %c0_29 = arith.constant 0 : index
    %96 = vector.load %arg6[%c0_27, %c0_28, %c0_29] : memref<1x1x1xf32, #tpu.memory_space<vmem>>, vector<1x1x1xf32>
    tpu.vector_store %arg6[%c0_27, %c0_28, %c0_29], %95 {strides = array<i32>} : memref<1x1x1xf32, #tpu.memory_space<vmem>>, vector<1x1x1xf32>,
    return
  }
  func.func @transform_0(%arg0: i32) -> (i32, i32) {
    %c0_i32 = arith.constant 0 : i32
    %c0_i32_0 = arith.constant 0 : i32
    return %arg0, %c0_i32 : i32, i32
  }
  func.func @transform_1(%arg0: i32) -> (i32, i32) {
    %c0_i32 = arith.constant 0 : i32
    %c0_i32_0 = arith.constant 0 : i32
    return %arg0, %c0_i32 : i32, i32
  }
  func.func @transform_2(%arg0: i32) -> (i32, i32) {
    %c0_i32 = arith.constant 0 : i32
    %c0_i32_0 = arith.constant 0 : i32
    return %arg0, %c0_i32 : i32, i32
  }
  func.func @transform_3(%arg0: i32) -> (i32, i32) {
    %c0_i32 = arith.constant 0 : i32
    %c0_i32_0 = arith.constant 0 : i32
    return %arg0, %c0_i32 : i32, i32
  }
  func.func @transform_4(%arg0: i32) -> (i32, i32) {
    %c0_i32 = arith.constant 0 : i32
    %c0_i32_0 = arith.constant 0 : i32
    return %arg0, %c0_i32 : i32, i32
  }
  func.func @transform_5(%arg0: i32) -> (i32, i32, i32) {
    %c0_i32 = arith.constant 0 : i32
    %c0_i32_0 = arith.constant 0 : i32
    %c0_i32_1 = arith.constant 0 : i32
    return %arg0, %c0_i32, %c0_i32_0 : i32, i32, i32
  }
}

</mosaic_0001>

<bundles_post_ra>
// kernel: tpu_custom_call.1
= control target key start
LH: loop header
LB: loop body
LE: loop exit
PB: predicated region body
PF: predicated region fallthrough
CT: control target
= control target key end

     0   :  { %10 = vsyncpa [#allocation3], 0  ;;  %s479_s0 = inlined_call_operand.hbm [shape: f32[2,256], index: 0, kind: input, shape index: {}]   ;;  %s480_s1 = inlined_call_operand.hbm [shape: f32[2,256], index: 1, kind: input, shape index: {}]   ;;  %s481_s2 = inlined_call_operand.hbm [shape: f32[2,1280], index: 2, kind: input, shape index: {}]   ;;  %s482_s3 = inlined_call_operand.vmem [shape: f32[2,32], index: 3, kind: input, shape index: {}]   ;;  %s483_s4 = inlined_call_operand.vmem [shape: f32[2,32], index: 4, kind: input, shape index: {}]   ;;  %s484_s5 = inlined_call_operand.hbm [shape: f32[1,1,1], index: 5, kind: output, shape index: {}]  }
   0x1   :  { %11 = vsyncpa [#allocation6], 0 }
   0x2   :  { %12 = vsyncpa [#allocation4], 0  ;;  %s401_s18 = smov [#allocation5]   ;;  %s402_s20 = smov [#allocation2]  }
   0x3   :  { %s29_s19 = sshll.u32 %s401_s18, 4  ;;  %s19_s21 = sshll.u32 %s402_s20, 4  ;;  %s30_s19 = int_to_ptr.vmem [resolvable:$true] %s29_s19  ;;  %s20_s21 = int_to_ptr.vmem [resolvable:$true] %s19_s21 }
   0x4   :  { %s323_s22 = scalar_lea.vmem %s30_s19, 64  ;;  %p328_p1 = scmp.lt.s32.totalorder %s30_s19, %s30_s19 }
   0x5   :  { %p324_p0 = scmp.ne.s32.totalorder %s30_s19, %s323_s22  ;;  %p329_p2 = scmp.lt.s32.totalorder %s323_s22, %s323_s22 }
   0x7   :  { %p330_p3 = por %p329_p2, %p328_p1 }
   0x9   :  { %p331_p4 = pnand %p330_p3, %p324_p0 }
   0xb   :  { %334 = shalt.err (!%p331_p4)
}
   0xc   :  { %32 = dma.hbm_to_vmem [thread:$0]  %s480_s1, 64, %s30_s19, [#allocation6]  }
   0xd   :  { %s343_s25 = scalar_lea.vmem %s20_s21, 64  ;;  %p348_p6 = scmp.lt.s32.totalorder %s20_s21, %s20_s21 }
   0xe   :  { %p344_p5 = scmp.ne.s32.totalorder %s20_s21, %s343_s25  ;;  %p349_p7 = scmp.lt.s32.totalorder %s343_s25, %s343_s25 }
  0x10   :  { %p350_p8 = por %p349_p7, %p348_p6 }
  0x12   :  { %p351_p9 = pnand %p350_p8, %p344_p5 }
  0x14   :  { %354 = shalt.err (!%p351_p9)
}
  0x15   :  { %22 = dma.hbm_to_vmem [thread:$0]  %s479_s0, 64, %s20_s21, [#allocation3]  }
  0x16   :  { %s403_s28 = smov [#allocation7]  }
  0x17   :  { %s39_s29 = sshll.u32 %s403_s28, 4  ;;  %s40_s29 = int_to_ptr.vmem [resolvable:$true] %s39_s29 }
  0x18   :  { %s363_s30 = scalar_lea.vmem %s40_s29, 320  ;;  %p368_p11 = scmp.lt.s32.totalorder %s40_s29, %s40_s29 }
  0x19   :  { %p364_p10 = scmp.ne.s32.totalorder %s40_s29, %s363_s30  ;;  %p369_p12 = scmp.lt.s32.totalorder %s363_s30, %s363_s30 }
  0x1b   :  { %p370_p13 = por %p369_p12, %p368_p11 }
  0x1d   :  { %p371_p0 = pnand %p370_p13, %p364_p10 }
  0x1f   :  { %374 = shalt.err (!%p371_p0)
}
  0x20   :  { %42 = dma.hbm_to_vmem [thread:$0]  %s481_s2, 320, %s40_s29, [#allocation6]  }
  0x21   :  { %395 = dma.done.wait [#allocation3], 64  }
  0x22   :  { %396 = vsyncadd [#allocation3], 4294967232 }
  0x23   :  { %397 = dma.done.wait [#allocation6], 384  }
  0x24   :  { %398 = vsyncadd [#allocation6], 4294966912  ;;  %v60_v0 = vlaneseq  ;;  %v404_v1 = vmov 1983009808   ;;  %v56_v6 = vld [vmem:[#allocation2] sm:$0xf] }
  0x25   :  { %v113_v2 = vunpack.c.l.s4 %v404_v1  ;;  %v57_v7 = vld [vmem:[#allocation5] sm:$0xf]  ;;  %s405_s0 = smov 17   ;;  %s406_s2 = smov 1   ;;  %v254_v11 = vld [vmem:[%s483_s4] sm:$0x3] }
  0x26   :  { %v116_v3 = vshrl.u32 %v60_v0, 7  ;;  %v452_v8 = vsub.f32 %v56_v6, %v57_v7  ;;  %s407_s7 = smov 16   ;;  %s408_s8 = smov 15   ;;  %v256_v12 = vmul.f32 1.442695, %v254_v11  ;;  %vm260_vm0 = vcmask 254976  }
  0x27   :  { %v114_v4 = vunpack.c.0.s8 %v113_v2  ;;  %v253_v13 = vld [vmem:[%s482_s3] sm:$0x3]  ;;  %v462_v19 = vld [vmem:[#allocation7] sm:$0xf]  ;;  %v61_v20 = vand.u32 127, %v60_v0  ;;  %v409_v25 = vmov 0.0  }
  0x28   :  { %311 = vpow2.f32 %v256_v12  ;;  %v255_v14 = vmul.f32 %v253_v13, %v253_v13  ;;  %v105_v21 = vmul.f32 1.442695, %v462_v19  ;;  %v144_v39 = vld [vmem:[#allocation7 + $0x8] sm:$0xf]  ;;  %v108_v46 = vld [vmem:[#allocation7 + $0x4] sm:$0xf] }
  0x29   :  { %v450_v5 = vsub.s32 %v114_v4, %v116_v3  ;;  %v62_v22 = vadd.s32 128, %v61_v20  ;;  %v67_v23 = vand.u32 15, %v61_v20  ;;  %vm87_vm1 = vcmp.ge.s32.totalorder %v61_v20, 16  ;;  %v171_v62 = vld [vmem:[#allocation7 + $0xc] sm:$0xf]  ;;  %s410_s14 = smov [#allocation8]  }
  0x2a   :  { %313 = vpow2.f32 %v105_v21  ;;  %v292_v26 = vsel %vm87_vm1, 1.0, %v409_v25  ;;  %vm151_vm5 = vcmp.lt.s32.totalorder %v61_v20, 17  ;;  %vm126_vm6 = vcmp.lt.s32.totalorder %v61_v20, 1  ;;  %s282_s15 = sshll.u32 %s410_s14, 4  ;;  %s283_s15 = int_to_ptr.vmem [resolvable:$true] %s282_s15 }
  0x2b   :  { %v118_v9 = vrot.slane %v452_v8, %v450_v5  ;;  %v74_v24 = vand.u32 15, %v62_v22  ;;  %vm93_vm2 = vcmp.gt.s32.totalorder %v67_v23, 0  ;;  %vm99_vm4 = vcmp.lt.s32.totalorder %v67_v23, 15  ;;  %s375_s17 = scalar_lea.vmem %s283_s15, 16  ;;  %s379_s18 = scalar_lea.vmem %s283_s15, 32 }
  0x2c   :  { %v293_v27 = vsel %vm93_vm2, 1.0, %v409_v25  ;;  %vm178_vm7 = vcmp.lt.s32.totalorder %v61_v20, 16  ;;  %v295_v34 = vsel %vm99_vm4, 1.0, %v409_v25  ;;  %v145_v45 = vand.u32 2147483647, %v144_v39  ;;  %p376_p1 = scmp.ne.s32.totalorder %s283_s15, %s375_s17  ;;  %p380_p2 = scmp.lt.s32.totalorder %s283_s15, %s283_s15 }
  0x2d   :  { %147 = vrot.lane.b32.xlu1 %v118_v9, %s405_s0  ;;  %122 = vrot.lane.b32.xlu0 %v118_v9, %s406_s2  ;;  %v119_v10 = vcombine.high %v118_v9, %v118_v9  ;;  %vm94_vm3 = vcmp.gt.s32.totalorder %v74_v24, 0  ;;  %v154_v30 = vmul.f32 %v293_v27, %v292_v26  ;;  %v109_v48 = vand.u32 2147483647, %v108_v46  ;;  %p381_p3 = scmp.lt.s32.totalorder %s379_s18, %s375_s17 }
  0x2e   :  { %v294_v31 = vsel %vm94_vm3, 1.0, %v409_v25  ;;  %vm100_vm8 = vcmp.lt.s32.totalorder %v74_v24, 15  ;;  %vm203_vm9 = vcmp.lt.s32.totalorder %v61_v20, 15  ;;  %v206_v53 = vmul.f32 %v295_v34, %v292_v26 }
  0x2f   :  { %v296_v59 = vsel %vm100_vm8, 1.0, %v409_v25  ;;  %v146_v61 = vadd.f32 %v145_v45, %v109_v48  ;;  %v172_v3 = vand.u32 2147483647, %v171_v62  ;;  %v223_v20 = vmul.f32 -0.5, %v462_v19  ;;  %p382_p4 = por %p381_p3, %p380_p2 }
  0x30   :  { %vm240_vm10 = vcmask 1041408   ;;  %vm274_vm11 = vcmask 0  }
  0x31   :  { %149 = vrot.lane.b32.xlu1 %v119_v10, %s405_s0  ;;  %124 = vrot.lane.b32.xlu0 %v119_v10, %s406_s2  ;;  %p383_p5 = pnand %p382_p4, %p376_p1 }
  0x35   :  { %176 = vrot.lane.b32.xlu1 %v119_v10, %s407_s7  ;;  %174 = vrot.lane.b32.xlu0 %v118_v9, %s407_s7  ;;  %v312_v15 = vpop.eup %311 }
  0x36   :  { %v258_v16 = vadd.f32 %v312_v15, %v255_v14  ;;  %v196_v14 = vld [vmem:[#allocation7 + $0x10] sm:$0xf]  ;;  %v173_v15 = vadd.f32 %v172_v3, %v146_v61 }
  0x37   :  { %v314_v44 = vpop.eup %313 }
  0x38   :  { %v259_v17 = vsub.f32 %v258_v16, %v254_v11  ;;  %v107_v55 = vmul.f32 %v314_v44, %v452_v8 }
  0x39   :  { %201 = vrot.lane.b32.xlu1 %v119_v10, %s408_s8  ;;  %199 = vrot.lane.b32.xlu0 %v118_v9, %s408_s8 }
  0x3a   :  { %v261_v18 = vsel %vm260_vm0, %v259_v17, 0.0  ;;  %v197_v17 = vand.u32 2147483647, %v196_v14 }
  0x3c   :  { %v198_v23 = vadd.f32 %v197_v17, %v173_v15 }
  0x5d   :  { %262 = vadd.xlane.f32.xlu1 %v261_v18 }
  0x9f   :  { %v148_v28 = vpop.permute.xlu1 %147  ;;  %v123_v29 = vpop.permute.xlu0 %122 }
  0xa3   :  { %v150_v32 = vpop.permute.xlu1 %149  ;;  %v125_v33 = vpop.permute.xlu0 %124 }
  0xa4   :  { %v152_v35 = vsel %vm151_vm5, %v148_v28, %v150_v32  ;;  %v153_v36 = vsel %vm151_vm5, %v150_v32, %v148_v28  ;;  %v127_v37 = vsel %vm126_vm6, %v123_v29, %v125_v33  ;;  %v128_v38 = vsel %vm126_vm6, %v125_v33, %v123_v29 }
  0xa5   :  { %v156_v40 = vmul.f32 %v154_v30, %v153_v36  ;;  %v157_v41 = vmul.f32 %v294_v31, %v152_v35  ;;  %v129_v42 = vmul.f32 %v293_v27, %v128_v38  ;;  %v130_v43 = vmul.f32 %v294_v31, %v127_v37 }
  0xa7   :  { %v160_v47 = vcombine.low %v156_v40, %v157_v41  ;;  %v133_v49 = vcombine.low %v129_v42, %v130_v43  ;;  %v177_v50 = vpop.permute.xlu1 %176  ;;  %v175_v51 = vpop.permute.xlu0 %174 }
  0xa8   :  { %v180_v52 = vsel %vm178_vm7, %v177_v50, %v175_v51  ;;  %v179_v58 = vsel %vm178_vm7, %v175_v51, %v177_v50 }
  0xa9   :  { %v167_v54 = vrot.slane %v160_v47, %v450_v5  ;;  %v140_v56 = vrot.slane %v133_v49, %v450_v5  ;;  %v181_v57 = vmul.f32 %v292_v26, %v180_v52  ;;  %v227_v26 = vmul.f32 0.00048828125, %v198_v23 }
  0xab   :  { %v142_v60 = vmul.f32 %v140_v56, %v108_v46  ;;  %v185_v63 = vcombine.low %v181_v57, %v179_v58  ;;  %v202_v0 = vpop.permute.xlu1 %201  ;;  %v200_v1 = vpop.permute.xlu0 %199  ;;  %v169_v2 = vmul.f32 %v167_v54, %v144_v39 }
  0xac   :  { %v204_v4 = vsel %vm203_vm9, %v200_v1, %v202_v0  ;;  %v205_v6 = vsel %vm203_vm9, %v202_v0, %v200_v1 }
  0xad   :  { %v143_v7 = vadd.f32 %v142_v60, %v107_v55  ;;  %v192_v8 = vrot.slane %v185_v63, %v450_v5  ;;  %v208_v9 = vmul.f32 %v206_v53, %v205_v6  ;;  %v209_v10 = vmul.f32 %v296_v59, %v204_v4 }
  0xaf   :  { %v170_v11 = vadd.f32 %v169_v2, %v143_v7  ;;  %v194_v12 = vmul.f32 %v192_v8, %v171_v62  ;;  %v212_v13 = vcombine.low %v208_v9, %v209_v10 }
  0xb1   :  { %v195_v16 = vadd.f32 %v194_v12, %v170_v11  ;;  %v219_v18 = vrot.slane %v212_v13, %v450_v5 }
  0xb3   :  { %v221_v21 = vmul.f32 %v219_v18, %v196_v14 }
  0xb5   :  { %v222_v22 = vadd.f32 %v221_v21, %v195_v16 }
  0xb7   :  { %v224_v24 = vmul.f32 %v222_v22, %v222_v22 }
  0xb9   :  { %v225_v25 = vmul.f32 0.25, %v224_v24 }
  0xbb   :  { %v226_v27 = vadd.f32 %v225_v25, %v223_v20 }
  0xbd   :  { %v228_v28 = vadd.f32 %v227_v26, %v226_v27 }
  0xbf   :  { %v236_v29 = vrot.slane %v228_v28, %v450_v5 }
  0xc1   :  { %v237_v30 = vcombine.high %v236_v29, %v236_v29  ;;  %v241_v31 = vsel %vm240_vm10, %v236_v29, 0.0 }
  0xc3   :  { %v242_v32 = vsel %vm240_vm10, %v237_v30, 0.0 }
  0xc4   :  { %v243_v33 = vadd.f32 %v242_v32, %v241_v31 }
  0xc6   :  { %244 = vadd.xlane.f32.xlu0 %v243_v33 }
  0xe6   :  { %v263_v34 = vpop.xlane.xlu1 %262 }
  0xe7   :  { %v264_v35 = vrot.slane %v263_v34, 4 }
  0xe9   :  { %v265_v36 = vadd.f32 %v264_v35, %v263_v34 }
  0xeb   :  { %v266_v37 = vrot.slane %v265_v36, 2 }
  0xed   :  { %v267_v40 = vadd.f32 %v266_v37, %v265_v36 }
  0xef   :  { %v268_v43 = vrot.slane %v267_v40, 1 }
  0xf1   :  { %v269_v5 = vadd.f32 %v268_v43, %v267_v40 }
 0x14f   :  { %v245_v38 = vpop.xlane.xlu0 %244 }
 0x150   :  { %v246_v39 = vrot.slane %v245_v38, 4 }
 0x152   :  { %v247_v19 = vadd.f32 %v246_v39, %v245_v38 }
 0x154   :  { %v248_v41 = vrot.slane %v247_v19, 2 }
 0x156   :  { %v249_v42 = vadd.f32 %v248_v41, %v247_v19 }
 0x158   :  { %v250_v44 = vrot.slane %v249_v42, 1 }
 0x15a   :  { %v251_v45 = vadd.f32 %v250_v44, %v249_v42 }
 0x15c   :  { %297 = vpush %v251_v45 }
 0x15d   :  { %299 = vpush %v269_v5 }
 0x18d   :  { %s298_s3 = spop %297 }
 0x18e   :  { %s300_s4 = spop %299 }
 0x18f   :  { %s271_s13 = smul.f32 0.25, %s300_s4 }
 0x191   :  { %s272_s16 = sadd.f32 %s298_s3, %s271_s13 }
 0x193   :  { %v273_v46 = vstv %s272_s16 }
 0x194   :  { %275 = vst.msk [vmem:[#allocation8] sm:$0x1] %vm274_vm11, %v273_v46 }
 0x195   :  { %386 = shalt.err (!%p383_p5)
}
 0x196   :  { %285 = dma.vmem_to_hbm [thread:$0]  %s283_s15, 16, %s484_s5, [#allocation4]  }
 0x197   :  { %399 = dma.done.wait [#allocation4], 16  }
 0x198   :  { %400 = vsyncadd [#allocation4], 4294967280 }
 0x199   :  { %289 = vsyncpa [#allocation3], 1 }
 0x19a   :  { %290 = vsyncpa [#allocation6], 1 }
 0x19b   :  { %291 = vsyncpa [#allocation4], 1 }

</bundles_post_ra>
